<compile_context>
chip_gen: v7x
topology: tpu7x:2x2x1
jax: 0.10.0
libtpu: 0.0.40
codegen_flags: <defaults>
</compile_context>

<pallas_src>
import math

import jax
import jax.numpy as jnp
import numpy as np
from jax.experimental import pallas as pl
from jax.experimental.pallas import tpu as pltpu

N_TAPS = 9  # 3x3 kernel taps


def _round_up(x, m):
    return ((x + m - 1) // m) * m


# --------------------------------------------------------------------------- kernel
def _dconv_kernel(s_ref, w_ref, b_ref, o_ref, acc_ref):
    """Tap-folded Dconv: one (tm, tk) @ (tk, O) step, accumulated over the K grid axis."""
    @pl.when(pl.program_id(1) == 0)
    def _init():
        acc_ref[...] = jnp.zeros_like(acc_ref)

    acc_ref[...] += jnp.dot(s_ref[...], w_ref[...],
                            preferred_element_type=jnp.float32)

    @pl.when(pl.program_id(1) == pl.num_programs(1) - 1)
    def _finalize():
        o_ref[...] = acc_ref[...] + b_ref[...]


# --------------------------------------------------------------------------- JAX glue
def _offsets_and_gates(alpha, W0, H0, Wp, Hp):
    """Literal port of _get_p / clamping: corner integer coords + bilinear gates.

    Returns (q_lt_x, q_lt_y, q_rb_x, q_rb_y), (g_lt, g_rb, g_lb, g_rt),
    each of shape (B, W0, H0, 9).
    """
    N = N_TAPS
    alpha = alpha.astype(jnp.float32)

    # _get_p_n
    rng = jnp.arange(-1, 2)
    pnx, pny = jnp.meshgrid(rng, rng, indexing="ij")
    p_n = jnp.concatenate([pnx.reshape(-1), pny.reshape(-1)])
    p_n = p_n.reshape(1, 2 * N, 1, 1).astype(jnp.float32)

    # _get_p_0
    p0x, p0y = jnp.meshgrid(jnp.arange(1, W0 + 1), jnp.arange(1, H0 + 1), indexing="ij")
    p0x = jnp.tile(p0x.reshape(1, 1, W0, H0), (1, N, 1, 1))
    p0y = jnp.tile(p0y.reshape(1, 1, W0, H0), (1, N, 1, 1))
    p_0 = jnp.concatenate([p0x, p0y], axis=1).astype(jnp.float32)

    # _get_p (literal torch math: x-part cos+sin, y-part cos-sin)
    ca, sa = jnp.cos(alpha), jnp.sin(alpha)
    p_n_rot = jnp.concatenate([p_n[:, :N] * ca + p_n[:, :N] * sa,
                               p_n[:, N:] * ca - p_n[:, N:] * sa], axis=1)
    p = p_0 + p_n_rot                                # (B, 2N, W, H)
    p = jnp.transpose(p, (0, 2, 3, 1))               # (B, W, H, 2N)
    px, py = p[..., :N], p[..., N:]

    flx, fly = jnp.floor(px), jnp.floor(py)
    q_lt_x = jnp.clip(flx, 0, Wp - 1)
    q_lt_y = jnp.clip(fly, 0, Hp - 1)
    q_rb_x = jnp.clip(flx + 1.0, 0, Wp - 1)
    q_rb_y = jnp.clip(fly + 1.0, 0, Hp - 1)
    g_lt = (1 + (q_lt_x - px)) * (1 + (q_lt_y - py))
    g_rb = (1 - (q_rb_x - px)) * (1 - (q_rb_y - py))
    g_lb = (1 + (q_lt_x - px)) * (1 - (q_rb_y - py))
    g_rt = (1 - (q_rb_x - px)) * (1 + (q_lt_y - py))
    return (q_lt_x, q_lt_y, q_rb_x, q_rb_y), (g_lt, g_rb, g_lb, g_rt)


def _bilinear_rows(x, alpha):
    """Gather + bilinear gating + 4-corner sum, emitted directly in the kernel's
    (M, K) row layout (row = b*W*H + i*H + j, col = n*C + c).  One HBM-sized
    materialization instead of the eight packed arrays of v1."""
    B, C, W0, H0 = x.shape
    N = N_TAPS
    x = x.astype(jnp.float32)
    Wp, Hp = W0 + 2, H0 + 2

    (q_lt_x, q_lt_y, q_rb_x, q_rb_y), (g_lt, g_rb, g_lb, g_rt) = \
        _offsets_and_gates(alpha, W0, H0, Wp, Hp)

    # ZeroPad2d(1), then NHWC-flatten so the gather pulls contiguous C-vectors.
    xp = jnp.pad(x, ((0, 0), (0, 0), (1, 1), (1, 1)))                 # (B, C, Wp, Hp)
    x_qc = jnp.transpose(xp, (0, 2, 3, 1)).reshape(B, Wp * Hp, C)     # (B, Wp*Hp, C)

    def take(qx, qy):
        idx = (qx * Hp + qy).astype(jnp.int32).reshape(B, W0 * H0 * N, 1)
        return jnp.take_along_axis(x_qc, idx, axis=1)                 # (B, W*H*N, C)

    def gate(g):
        return g.reshape(B, W0 * H0 * N, 1)

    s = (gate(g_lt) * take(q_lt_x, q_lt_y)
         + gate(g_rb) * take(q_rb_x, q_rb_y)
         + gate(g_lb) * take(q_lt_x, q_rb_y)
         + gate(g_rt) * take(q_rb_x, q_lt_y))                         # (B, W*H*N, C)
    return s.reshape(B * W0 * H0, N * C)                              # (M, K)


def _make_buffer(weight):
    """Dconv weight surgery: flat (O, C, 9) buffer."""
    O, C = weight.shape[0], weight.shape[1]
    wflat = weight.reshape(O, C, N_TAPS).astype(jnp.float32)
    buf = wflat.at[..., jnp.array([3, 4, 5])].set(
        -wflat[..., jnp.array([0, 1, 2])] - wflat[..., jnp.array([6, 7, 8])])
    return buf


def _make_w_kn(weight):
    """Fold the stride-3 conv over the 3x3-tiled offset map into a (K, O) matrix
    laid out to match the activation columns k = n*C + c."""
    O, C = weight.shape[0], weight.shape[1]
    buf = _make_buffer(weight)                                        # (O, C, 9)
    # tap n = 3*kj + ki of the offset map meets buffer[o, c, ki, kj] -> transpose taps
    w_eff = jnp.transpose(buf.reshape(O, C, 3, 3), (0, 1, 3, 2)).reshape(O, C, N_TAPS)
    return jnp.transpose(w_eff, (2, 1, 0)).reshape(N_TAPS * C, O)     # (K, O)


# --------------------------------------------------------------------------- pallas wrapper
def ddconv2d_pallas(x, alpha, weight, bias, *, tm=256, max_tk=1152):
    """x: (B,C,W,H), alpha: (B,1,W,H), weight: (O,C,3,3), bias: (O,) -> (B,O,W,H)."""
    B, C, W0, H0 = x.shape
    O = weight.shape[0]
    M, K = B * W0 * H0, C * N_TAPS

    # XLA glue: single fused gather/gate/sum, already in matmul row layout.
    s = _bilinear_rows(x, alpha)                                      # (M, K) f32
    w_kn = _make_w_kn(weight)                                         # (K, O) f32
    bias2d = bias.reshape(1, O).astype(jnp.float32)

    # Tiling: big lane-contiguous row tiles; K tiled only when it gets large.
    tm_eff = min(tm, _round_up(M, 8))
    M_pad = _round_up(M, tm_eff)
    if K <= max_tk:
        tk, K_pad = K, K
    else:
        tk = max_tk                      # 1152 = 9 * 128, keeps VMEM bounded for big C
        K_pad = _round_up(K, tk)

    if M_pad != M or K_pad != K:
        s = jnp.pad(s, ((0, M_pad - M), (0, K_pad - K)))
    if K_pad != K:
        w_kn = jnp.pad(w_kn, ((0, K_pad - K), (0, 0)))

    grid = (M_pad // tm_eff, K_pad // tk)

    out = pl.pallas_call(
        _dconv_kernel,
        out_shape=jax.ShapeDtypeStruct((M_pad, O), jnp.float32),
        grid_spec=pltpu.PrefetchScalarGridSpec(
            num_scalar_prefetch=0,
            grid=grid,
            in_specs=[pl.BlockSpec((tm_eff, tk), lambda i, k: (i, k)),   # activations
                      pl.BlockSpec((tk, O), lambda i, k: (k, 0)),        # folded weights
                      pl.BlockSpec((1, O), lambda i, k: (0, 0))],        # bias
            out_specs=pl.BlockSpec((tm_eff, O), lambda i, k: (i, 0)),
            scratch_shapes=[pltpu.VMEM((tm_eff, O), jnp.float32)],
        ),
        compiler_params=pltpu.CompilerParams(
            dimension_semantics=("parallel", "arbitrary")),
    )(s, w_kn, bias2d)

    out = out[:M]
    return out.reshape(B, W0, H0, O).transpose(0, 3, 1, 2)            # NCHW


# --------------------------------------------------------------------------- literal jnp reference
def ddconv2d_reference(x, alpha, weight, bias):
    """Literal translation of the PyTorch forward (expend_map + strided conv)."""
    B, C, W0, H0 = x.shape
    O = weight.shape[0]
    N = N_TAPS
    Wp, Hp = W0 + 2, H0 + 2
    (q_lt_x, q_lt_y, q_rb_x, q_rb_y), (g_lt, g_rb, g_lb, g_rt) = \
        _offsets_and_gates(alpha, W0, H0, Wp, Hp)

    xp = jnp.pad(x.astype(jnp.float32), ((0, 0), (0, 0), (1, 1), (1, 1)))
    x_flat = xp.reshape(B, C, Wp * Hp)

    def gather(qx, qy):
        idx = (qx * Hp + qy).astype(jnp.int32).reshape(B, 1, -1)
        idx = jnp.broadcast_to(idx, (B, C, idx.shape[-1]))
        return jnp.take_along_axis(x_flat, idx, axis=-1).reshape(B, C, W0, H0, N)

    x_lt = gather(q_lt_x, q_lt_y)
    x_rb = gather(q_rb_x, q_rb_y)
    x_lb = gather(q_lt_x, q_rb_y)
    x_rt = gather(q_rb_x, q_lt_y)
    expend = (g_lt[:, None] * x_lt + g_rb[:, None] * x_rb
              + g_lb[:, None] * x_lb + g_rt[:, None] * x_rt)          # (B,C,W,H,N)

    # _reshape_x_offset
    ks = 3
    xo = jnp.transpose(expend, (0, 1, 3, 2, 4))                       # (B,C,H,W,N)
    chunks = [xo[..., s:s + ks].reshape(B, C, H0, W0 * ks) for s in range(0, N, ks)]
    xo = jnp.concatenate(chunks, axis=-1)
    xo = xo.reshape(B, C, H0 * ks, W0 * ks)
    xo = jnp.transpose(xo, (0, 1, 3, 2))                              # (B,C,3W,3H)

    buf = _make_buffer(weight).reshape(O, C, 3, 3)
    y = jax.lax.conv_general_dilated(
        xo, buf, window_strides=(3, 3), padding="VALID",
        dimension_numbers=("NCHW", "OIHW", "NCHW"))
    return y + bias.reshape(1, O, 1, 1)


# --------------------------------------------------------------------------- main
if __name__ == "__main__":
    key = jax.random.PRNGKey(0)
    kx, ka, kw, kb = jax.random.split(key, 4)

    B, C, W0, H0 = 2, 4, 16, 16     # inc == outc == 4 (module wires Dconv(outc, inc))
    O = C
    x = jax.random.normal(kx, (B, C, W0, H0), jnp.float32)
    alpha = jax.random.uniform(ka, (B, 1, W0, H0), jnp.float32,
                               minval=-math.pi, maxval=math.pi)

    # deterministic parameter init matching kaiming_uniform_(a=sqrt(5)) bounds
    fan_in = C * 9
    bound = 1.0 / math.sqrt(fan_in)
    weight = jax.random.uniform(kw, (O, C, 3, 3), jnp.float32, -bound, bound)
    bias = jax.random.uniform(kb, (O,), jnp.float32, -bound, bound)

    y = jax.block_until_ready(ddconv2d_pallas(x, alpha, weight, bias))
    y_ref = jax.block_until_ready(ddconv2d_reference(x, alpha, weight, bias))

    assert y.shape == (B, O, W0, H0), y.shape
    if not np.allclose(np.asarray(y), np.asarray(y_ref), rtol=1e-4, atol=1e-4):
        raise AssertionError("Pallas kernel output does not match literal reference")
    print("KERNEL_OK")
</pallas_src>

<mosaic_0001>
module attributes {stable_mosaic.version = 11 : i64} {
  func.func @_dconv_kernel(%arg0: i32, %arg1: i32, %arg2: memref<256x36xf32, #tpu.memory_space<vmem>>, %arg3: memref<36x4xf32, #tpu.memory_space<vmem>>, %arg4: memref<1x4xf32, #tpu.memory_space<vmem>>, %arg5: memref<256x4xf32, #tpu.memory_space<vmem>>, %arg6: memref<256x4xf32, #tpu.memory_space<vmem>>) attributes {dimension_semantics = [#tpu.dimension_semantics<parallel>, #tpu.dimension_semantics<arbitrary>], iteration_bounds = array<i64: 2, 1>, scalar_prefetch = 0 : i64, scratch_operands = 1 : i64, tpu.core_type = #tpu.core_type<tc>, window_params = [{transform_indices = @transform_0, window_bounds = array<i64: 256, 36>}, {transform_indices = @transform_1, window_bounds = array<i64: 36, 4>}, {pipeline_mode = #tpu.pipeline_mode<synchronous>, transform_indices = @transform_2, window_bounds = array<i64: 1, 4>}, {transform_indices = @transform_3, window_bounds = array<i64: 256, 4>}]} {
    %c0_i32 = arith.constant 0 : i32
    %0 = arith.cmpi eq, %arg1, %c0_i32 : i32
    %1 = arith.extui %0 : i1 to i32
    %c0_i32_0 = arith.constant 0 : i32
    %2 = arith.cmpi ne, %1, %c0_i32_0 : i32
    scf.if %2 {
      %cst_10 = arith.constant 0.000000e+00 : f32
      %12 = vector.broadcast %cst_10 : f32 to vector<256x4xf32>
      %c0_11 = arith.constant 0 : index
      %c0_12 = arith.constant 0 : index
      %13 = vector.load %arg6[%c0_11, %c0_12] : memref<256x4xf32, #tpu.memory_space<vmem>>, vector<256x4xf32>
      tpu.vector_store %arg6[%c0_11, %c0_12], %12 {strides = array<i32>} : memref<256x4xf32, #tpu.memory_space<vmem>>, vector<256x4xf32>,
    } else {
    }
    %c0 = arith.constant 0 : index
    %c0_1 = arith.constant 0 : index
    %3 = vector.load %arg6[%c0, %c0_1] : memref<256x4xf32, #tpu.memory_space<vmem>>, vector<256x4xf32>
    %c0_2 = arith.constant 0 : index
    %c0_3 = arith.constant 0 : index
    %4 = vector.load %arg2[%c0_2, %c0_3] : memref<256x36xf32, #tpu.memory_space<vmem>>, vector<256x36xf32>
    %c0_4 = arith.constant 0 : index
    %c0_5 = arith.constant 0 : index
    %5 = vector.load %arg3[%c0_4, %c0_5] : memref<36x4xf32, #tpu.memory_space<vmem>>, vector<36x4xf32>
    %cst = arith.constant dense<0.000000e+00> : vector<256x4xf32>
    %6 = tpu.matmul %4, %5, %cst {dimension_numbers = #tpu.dot_dimension_numbers<[1], [0], [0], [1], [0, 0, 1, 1], [], []>} : vector<256x36xf32>, vector<36x4xf32>, vector<256x4xf32> -> vector<256x4xf32>
    %7 = arith.addf %3, %6 : vector<256x4xf32>
    %c0_6 = arith.constant 0 : index
    %c0_7 = arith.constant 0 : index
    %8 = vector.load %arg6[%c0_6, %c0_7] : memref<256x4xf32, #tpu.memory_space<vmem>>, vector<256x4xf32>
    tpu.vector_store %arg6[%c0_6, %c0_7], %7 {strides = array<i32>} : memref<256x4xf32, #tpu.memory_space<vmem>>, vector<256x4xf32>,
    %c0_i32_8 = arith.constant 0 : i32
    %9 = arith.cmpi eq, %arg1, %c0_i32_8 : i32
    %10 = arith.extui %9 : i1 to i32
    %c0_i32_9 = arith.constant 0 : i32
    %11 = arith.cmpi ne, %10, %c0_i32_9 : i32
    scf.if %11 {
      %c0_10 = arith.constant 0 : index
      %c0_11 = arith.constant 0 : index
      %12 = vector.load %arg6[%c0_10, %c0_11] : memref<256x4xf32, #tpu.memory_space<vmem>>, vector<256x4xf32>
      %c0_12 = arith.constant 0 : index
      %c0_13 = arith.constant 0 : index
      %13 = vector.load %arg4[%c0_12, %c0_13] : memref<1x4xf32, #tpu.memory_space<vmem>>, vector<1x4xf32>
      %14 = vector.broadcast %13 : vector<1x4xf32> to vector<256x4xf32>
      %15 = arith.addf %12, %14 : vector<256x4xf32>
      %c0_14 = arith.constant 0 : index
      %c0_15 = arith.constant 0 : index
      %16 = vector.load %arg5[%c0_14, %c0_15] : memref<256x4xf32, #tpu.memory_space<vmem>>, vector<256x4xf32>
      tpu.vector_store %arg5[%c0_14, %c0_15], %15 {strides = array<i32>} : memref<256x4xf32, #tpu.memory_space<vmem>>, vector<256x4xf32>,
    } else {
    }
    return
  }
  func.func @transform_0(%arg0: i32, %arg1: i32) -> (i32, i32) {
    %c0_i32 = arith.constant 0 : i32
    return %arg0, %arg1 : i32, i32
  }
  func.func @transform_1(%arg0: i32, %arg1: i32) -> (i32, i32) {
    %c0_i32 = arith.constant 0 : i32
    %c0_i32_0 = arith.constant 0 : i32
    return %arg1, %c0_i32 : i32, i32
  }
  func.func @transform_2(%arg0: i32, %arg1: i32) -> (i32, i32) {
    %c0_i32 = arith.constant 0 : i32
    %c0_i32_0 = arith.constant 0 : i32
    %c0_i32_1 = arith.constant 0 : i32
    return %c0_i32, %c0_i32_0 : i32, i32
  }
  func.func @transform_3(%arg0: i32, %arg1: i32) -> (i32, i32) {
    %c0_i32 = arith.constant 0 : i32
    %c0_i32_0 = arith.constant 0 : i32
    return %arg0, %c0_i32 : i32, i32
  }
}

</mosaic_0001>

<bundles_post_ra>
// kernel: tpu_custom_call.1
= control target key start
LH: loop header
LB: loop body
LE: loop exit
PB: predicated region body
PF: predicated region fallthrough
CT: control target
= control target key end

     0   :  { %s1130_s12 = smov 0   ;;  %s1132_s13 = smov 0   ;;  %s1435_s0 = inlined_call_operand.vmem [shape: f32[512,36], index: 0, kind: input, shape index: {}]   ;;  %s1436_s1 = inlined_call_operand.vmem [shape: f32[36,4], index: 1, kind: input, shape index: {}]   ;;  %s1437_s2 = inlined_call_operand.vmem [shape: f32[1,4], index: 2, kind: input, shape index: {}]   ;;  %s1438_s3 = inlined_call_operand.vmem [shape: f32[512,4], index: 3, kind: output, shape index: {}]  }
   0x1   :  { %s1134_s14 = smov 0  }
   0x2 LB: > { %s25_s15 = sadd.s32 1, %s1103_s13  ;;  %p910_p0 = scmp.ge.s32.totalorder %s1107_s14, 1  ;;  %s1107_s14 = sphi %s1134_s14, %s13_s14   ;;  %s1103_s13 = sphi %s1132_s13, %s1441_s13   ;;  %s1099_s12 = sphi %s1130_s12, %s1440_s12  }
   0x3   : > { %p27_p1 = scmp.ge.s32.totalorder %s25_s15, 2  ;;  %p166_p2 = scmp.lt.s32.totalorder %s1107_s14, 3 }
   0x5   : > { %s1443_s15 = smov (%p27_p1, %s25_s15), 0  ;;  %p167_p3 = pnand %p910_p0, %p166_p2 }
   0x6   : > { %v320_v0 = vld [vmem:[%s1436_s1] sm:$0xff] (!%p167_p3)  ;;  %v321_v1 = vld [vmem:[%s1436_s1 + $0x8] sm:$0xff] (!%p167_p3)  ;;  %v322_v2 = vld [vmem:[%s1436_s1 + $0x10] sm:$0xff] (!%p167_p3)  ;;  %s911_s22 = sshll.u32 (!%p167_p3), %s1099_s12, 5  ;;  %vm223_vm0 = vcmask (!%p167_p3), 31744   ;;  %v1109_v6 = vmov (!%p167_p3), 0.0  }
   0x7   : > { %170 = sbr.rel (%p167_p3) target bundleno = 275 (0x113), region = 32  ;;  %v1046_v3 = vpack.c.bf16 (!%p167_p3), %v321_v1, %v320_v0  ;;  %v323_v4 = vld [vmem:[%s1436_s1 + $0x18] sm:$0xff] (!%p167_p3)  ;;  %p1165_p4 = scmp.lt.s32.totalorder (!%p167_p3), %s911_s22, 63  ;;  %225 = vst.msk [vmem:[#allocation2 + $0x8] sm:$0xff] (!%p167_p3), %vm223_vm0, %v1109_v6  ;;  %224 = vst.msk [vmem:[#allocation2] sm:$0xff] (!%p167_p3), %vm223_vm0, %v1109_v6  ;;  %vm422_vm1 = vcmask (!%p167_p3), 1043456  }
   0x8   : > { %v1050_v5 = vpack.c.bf16 (!%p167_p3), %v323_v4, %v322_v2  ;;  %226 = vst.msk [vmem:[#allocation2 + $0x10] sm:$0xff] (!%p167_p3), %vm223_vm0, %v1109_v6  ;;  %227 = vst.msk [vmem:[#allocation2 + $0x18] sm:$0xff] (!%p167_p3), %vm223_vm0, %v1109_v6  ;;  %v324_v7 = vld [vmem:[%s1436_s1 + $0x20] sm:$0xf] (!%p167_p3)  ;;  %vm325_vm2 = vcmask (!%p167_p3), 293888  }
   0x9   : > { %228 = vst.msk [vmem:[#allocation2 + $0x20] sm:$0xff] (!%p167_p3), %vm223_vm0, %v1109_v6  ;;  %229 = vst.msk [vmem:[#allocation2 + $0x28] sm:$0xff] (!%p167_p3), %vm223_vm0, %v1109_v6  ;;  %1047 = vmatprep.subr.bf16.mxu0 (!%p167_p3), %v1046_v3  ;;  %1054 = vmatprep.subr.bf16.mxu1 (!%p167_p3), %v1046_v3  ;;  %v1295_v4 = vld [vmem:[%s1437_s2] ss:$0 sm:$0xff] (!%p167_p3) }
   0xa   : > { %230 = vst.msk [vmem:[#allocation2 + $0x30] sm:$0xff] (!%p167_p3), %vm223_vm0, %v1109_v6  ;;  %231 = vst.msk [vmem:[#allocation2 + $0x38] sm:$0xff] (!%p167_p3), %vm223_vm0, %v1109_v6  ;;  %1049 = vmatpush3.bf16.msra.mxu0 (!%p167_p3), %v1046_v3  ;;  %1057 = vmatpush3.bf16.msra.mxu1 (!%p167_p3), %v1046_v3 }
   0xb   : > { %232 = vst.msk [vmem:[#allocation2 + $0x40] sm:$0xff] (!%p167_p3), %vm223_vm0, %v1109_v6  ;;  %233 = vst.msk [vmem:[#allocation2 + $0x48] sm:$0xff] (!%p167_p3), %vm223_vm0, %v1109_v6  ;;  %1051 = vmatprep.subr.bf16.mxu0 (!%p167_p3), %v1050_v5  ;;  %1055 = vmatprep.subr.bf16.mxu1 (!%p167_p3), %v1050_v5 }
   0xc   : > { %234 = vst.msk [vmem:[#allocation2 + $0x50] sm:$0xff] (!%p167_p3), %vm223_vm0, %v1109_v6  ;;  %235 = vst.msk [vmem:[#allocation2 + $0x58] sm:$0xff] (!%p167_p3), %vm223_vm0, %v1109_v6 }
   0xd   : > { %236 = vst.msk [vmem:[#allocation2 + $0x60] sm:$0xff] (!%p167_p3), %vm223_vm0, %v1109_v6  ;;  %237 = vst.msk [vmem:[#allocation2 + $0x68] sm:$0xff] (!%p167_p3), %vm223_vm0, %v1109_v6 }
   0xe   : > { %238 = vst.msk [vmem:[#allocation2 + $0x70] sm:$0xff] %vm223_vm0, %v1109_v6  ;;  %239 = vst.msk [vmem:[#allocation2 + $0x78] sm:$0xff] %vm223_vm0, %v1109_v6  ;;  %s1445_s22 = smov (!%p1165_p4, %s911_s22), 63  ;;  %1053 = vmatpush3.bf16.msra.mxu0 %v1050_v5  ;;  %1058 = vmatpush3.bf16.msra.mxu1 %v1050_v5  ;;  %v257_v40 = vld [vmem:[#allocation2 + $0x8] sm:$0xff]  ;;  %v256_v42 = vld [vmem:[#allocation2] sm:$0xff] }
   0xf   : > { %240 = vst.msk [vmem:[#allocation2 + $0x80] sm:$0xff] %vm223_vm0, %v1109_v6  ;;  %241 = vst.msk [vmem:[#allocation2 + $0x88] sm:$0xff] %vm223_vm0, %v1109_v6  ;;  %s912_s26 = sshll.u32 %s1445_s22, 3  ;;  %996 = vmatprep.subr.msk.mxu0 %vm422_vm1, %v324_v7  ;;  %1056 = vmatprep.subr.msk.mxu1 %vm422_vm1, %v324_v7  ;;  %v259_v52 = vld [vmem:[#allocation2 + $0x18] sm:$0xff]  ;;  %v258_v54 = vld [vmem:[#allocation2 + $0x10] sm:$0xff] }
  0x10   : > { %242 = vst.msk [vmem:[#allocation2 + $0x90] sm:$0xff] %vm223_vm0, %v1109_v6  ;;  %243 = vst.msk [vmem:[#allocation2 + $0x98] sm:$0xff] %vm223_vm0, %v1109_v6  ;;  %s1216_s4 = scalar_lea.vmem %s1435_s0, %s912_s26  ;;  %v261_v0 = vld [vmem:[#allocation2 + $0x28] sm:$0xff]  ;;  %v260_v2 = vld [vmem:[#allocation2 + $0x20] sm:$0xff]  ;;  %s1304_s9 = scalar_lea.vmem %s1438_s3, %s912_s26 }
  0x11   : > { %244 = vst.msk [vmem:[#allocation2 + $0xa0] sm:$0xff] %vm223_vm0, %v1109_v6  ;;  %245 = vst.msk [vmem:[#allocation2 + $0xa8] sm:$0xff] %vm223_vm0, %v1109_v6  ;;  %v288_v8 = vld [vmem:[%s1216_s4] sm:$0xff]  ;;  %v289_v10 = vld [vmem:[%s1216_s4 + $0x8] sm:$0xff] }
  0x12   : > { %246 = vst.msk [vmem:[#allocation2 + $0xb0] sm:$0xff] %vm223_vm0, %v1109_v6  ;;  %247 = vst.msk [vmem:[#allocation2 + $0xb8] sm:$0xff] %vm223_vm0, %v1109_v6  ;;  %v304_v9 = vld [vmem:[%s1216_s4 + $0x80] sm:$0xff]  ;;  %998 = vmatprep.mubr.msk.f32.mxu0 %vm325_vm2, %v288_v8  ;;  %v305_v11 = vld [vmem:[%s1216_s4 + $0x88] sm:$0xff]  ;;  %997 = vmatpush3.msk.msra.mxu0 %vm422_vm1, %v324_v7 }
  0x13   : > { %248 = vst.msk [vmem:[#allocation2 + $0xc0] sm:$0xff] %vm223_vm0, %v1109_v6  ;;  %249 = vst.msk [vmem:[#allocation2 + $0xc8] sm:$0xff] %vm223_vm0, %v1109_v6  ;;  %1022 = vmatprep.mubr.msk.f32.mxu1 %vm325_vm2, %v304_v9  ;;  %v290_v12 = vld [vmem:[%s1216_s4 + $0x10] sm:$0xff]  ;;  %1059 = vmatpush3.msk.msra.mxu1 %vm422_vm1, %v324_v7  ;;  %v291_v14 = vld [vmem:[%s1216_s4 + $0x18] sm:$0xff] }
  0x14   : > { %250 = vst.msk [vmem:[#allocation2 + $0xd0] sm:$0xff] %vm223_vm0, %v1109_v6  ;;  %251 = vst.msk [vmem:[#allocation2 + $0xd8] sm:$0xff] %vm223_vm0, %v1109_v6  ;;  %v306_v13 = vld [vmem:[%s1216_s4 + $0x90] sm:$0xff]  ;;  %999 = vmatmul.mubr.msk.f32.vlgmr.msra.gmra.mrb[0].mxu0 %vm325_vm2, %v289_v10  ;;  %1023 = vmatmul.mubr.msk.f32.vlgmr.msra.gmra.mrb[0].mxu1 %vm325_vm2, %v305_v11  ;;  %v307_v15 = vld [vmem:[%s1216_s4 + $0x98] sm:$0xff] }
  0x15   : > { %252 = vst.msk [vmem:[#allocation2 + $0xe0] sm:$0xff] %vm223_vm0, %v1109_v6  ;;  %253 = vst.msk [vmem:[#allocation2 + $0xe8] sm:$0xff] %vm223_vm0, %v1109_v6  ;;  %1001 = vmatprep.mubr.msk.f32.mxu0 %vm325_vm2, %v290_v12  ;;  %1025 = vmatprep.mubr.msk.f32.mxu1 %vm325_vm2, %v306_v13  ;;  %v292_v16 = vld [vmem:[%s1216_s4 + $0x20] sm:$0xff]  ;;  %v293_v18 = vld [vmem:[%s1216_s4 + $0x28] sm:$0xff] }
  0x16   : > { %254 = vst.msk [vmem:[#allocation2 + $0xf0] sm:$0xff] %vm223_vm0, %v1109_v6  ;;  %255 = vst.msk [vmem:[#allocation2 + $0xf8] sm:$0xff] %vm223_vm0, %v1109_v6  ;;  %v308_v17 = vld [vmem:[%s1216_s4 + $0xa0] sm:$0xff]  ;;  %v309_v19 = vld [vmem:[%s1216_s4 + $0xa8] sm:$0xff] }
  0x17   : > { %v294_v20 = vld [vmem:[%s1216_s4 + $0x30] sm:$0xff]  ;;  %v295_v22 = vld [vmem:[%s1216_s4 + $0x38] sm:$0xff]  ;;  %v296_v24 = vld [vmem:[%s1216_s4 + $0x40] sm:$0xff] }
  0x18   : > { %1002 = vmatmul.mubr.msk.f32.gmra.mrb[2].mxu0 %vm325_vm2, %v291_v14  ;;  %1026 = vmatmul.mubr.msk.f32.gmra.mrb[2].mxu1 %vm325_vm2, %v307_v15  ;;  %v310_v21 = vld [vmem:[%s1216_s4 + $0xb0] sm:$0xff]  ;;  %v311_v23 = vld [vmem:[%s1216_s4 + $0xb8] sm:$0xff]  ;;  %v312_v25 = vld [vmem:[%s1216_s4 + $0xc0] sm:$0xff] }
  0x19   : > { %1004 = vmatprep.mubr.msk.f32.mxu0 %vm325_vm2, %v292_v16  ;;  %1028 = vmatprep.mubr.msk.f32.mxu1 %vm325_vm2, %v308_v17  ;;  %v297_v26 = vld [vmem:[%s1216_s4 + $0x48] sm:$0xff]  ;;  %v298_v28 = vld [vmem:[%s1216_s4 + $0x50] sm:$0xff]  ;;  %v299_v30 = vld [vmem:[%s1216_s4 + $0x58] sm:$0xff] }
  0x1a   : > { %v313_v27 = vld [vmem:[%s1216_s4 + $0xc8] sm:$0xff]  ;;  %v314_v29 = vld [vmem:[%s1216_s4 + $0xd0] sm:$0xff]  ;;  %v315_v31 = vld [vmem:[%s1216_s4 + $0xd8] sm:$0xff] }
  0x1b   : > { %v300_v32 = vld [vmem:[%s1216_s4 + $0x60] sm:$0xff]  ;;  %v301_v34 = vld [vmem:[%s1216_s4 + $0x68] sm:$0xff]  ;;  %v302_v36 = vld [vmem:[%s1216_s4 + $0x70] sm:$0xff] }
  0x1c   : > { %1005 = vmatmul.mubr.msk.f32.gmra.mrb[4].mxu0 %vm325_vm2, %v293_v18  ;;  %1029 = vmatmul.mubr.msk.f32.gmra.mrb[4].mxu1 %vm325_vm2, %v309_v19  ;;  %v316_v33 = vld [vmem:[%s1216_s4 + $0xe0] sm:$0xff]  ;;  %v317_v35 = vld [vmem:[%s1216_s4 + $0xe8] sm:$0xff]  ;;  %v318_v37 = vld [vmem:[%s1216_s4 + $0xf0] sm:$0xff] }
  0x1d   : > { %1007 = vmatprep.mubr.msk.f32.mxu0 %vm325_vm2, %v294_v20  ;;  %1031 = vmatprep.mubr.msk.f32.mxu1 %vm325_vm2, %v310_v21  ;;  %v303_v38 = vld [vmem:[%s1216_s4 + $0x78] sm:$0xff]  ;;  %v273_v41 = vld [vmem:[#allocation2 + $0x88] sm:$0xff]  ;;  %v272_v43 = vld [vmem:[#allocation2 + $0x80] sm:$0xff] }
  0x1e   : > { %v319_v39 = vld [vmem:[%s1216_s4 + $0xf8] sm:$0xff]  ;;  %v274_v55 = vld [vmem:[#allocation2 + $0x90] sm:$0xff]  ;;  %v277_v1 = vld [vmem:[#allocation2 + $0xa8] sm:$0xff] }
  0x1f   : > { %v275_v53 = vld [vmem:[#allocation2 + $0x98] sm:$0xff]  ;;  %v276_v3 = vld [vmem:[#allocation2 + $0xa0] sm:$0xff]  ;;  %v262_v17 = vld [vmem:[#allocation2 + $0x30] sm:$0xff] }
  0x20   : > { %1008 = vmatmul.mubr.msk.f32.gmra.mrb[6].mxu0 %vm325_vm2, %v295_v22  ;;  %1032 = vmatmul.mubr.msk.f32.gmra.mrb[6].mxu1 %vm325_vm2, %v311_v23  ;;  %v263_v11 = vld [vmem:[#allocation2 + $0x38] sm:$0xff]  ;;  %v278_v22 = vld [vmem:[#allocation2 + $0xb0] sm:$0xff] }
  0x21   : > { %1010 = vmatprep.mubr.msk.f32.mxu0 %vm325_vm2, %v296_v24  ;;  %1034 = vmatprep.mubr.msk.f32.mxu1 %vm325_vm2, %v312_v25  ;;  %v279_v12 = vld [vmem:[#allocation2 + $0xb8] sm:$0xff] }
  0x24   : > { %1011 = vmatmul.mubr.msk.f32.gmra.mrb[8].mxu0 %vm325_vm2, %v297_v26  ;;  %1035 = vmatmul.mubr.msk.f32.gmra.mrb[8].mxu1 %vm325_vm2, %v313_v27 }
  0x25   : > { %1013 = vmatprep.mubr.msk.f32.mxu0 %vm325_vm2, %v298_v28  ;;  %1037 = vmatprep.mubr.msk.f32.mxu1 %vm325_vm2, %v314_v29 }
  0x28   : > { %1014 = vmatmul.mubr.msk.f32.gmra.mrb[10].mxu0 %vm325_vm2, %v299_v30  ;;  %1038 = vmatmul.mubr.msk.f32.gmra.mrb[10].mxu1 %vm325_vm2, %v315_v31  ;;  %v265_v31 = vld [vmem:[#allocation2 + $0x48] sm:$0xff] }
  0x29   : > { %1016 = vmatprep.mubr.msk.f32.mxu0 %vm325_vm2, %v300_v32  ;;  %1040 = vmatprep.mubr.msk.f32.mxu1 %vm325_vm2, %v316_v33  ;;  %v281_v32 = vld [vmem:[#allocation2 + $0xc8] sm:$0xff] }
  0x2c   : > { %1017 = vmatmul.mubr.msk.f32.gmra.mrb[12].mxu0 %vm325_vm2, %v301_v34  ;;  %1041 = vmatmul.mubr.msk.f32.gmra.mrb[12].mxu1 %vm325_vm2, %v317_v35 }
  0x2d   : > { %1019 = vmatprep.mubr.msk.f32.mxu0 %vm325_vm2, %v302_v36  ;;  %1043 = vmatprep.mubr.msk.f32.mxu1 %vm325_vm2, %v318_v37  ;;  %v264_v37 = vld [vmem:[#allocation2 + $0x40] sm:$0xff] }
  0x30   : > { %1020 = vmatmul.mubr.msk.f32.gmra.mrb[14].mxu0 %vm325_vm2, %v303_v38  ;;  %1044 = vmatmul.mubr.msk.f32.gmra.mrb[14].mxu1 %vm325_vm2, %v319_v39 }
  0xe7   : > { %v1000_v44 = vpop.f32.mrb[0].mxu0  ;;  %v1024_v45 = vpop.f32.mrb[0].mxu1 }
  0xe8   : > { %v652_v46 = vadd.f32 %v1000_v44, %v257_v40  ;;  %v668_v47 = vadd.f32 %v1024_v45, %v273_v41  ;;  %v492_v48 = vpop.f32.mrb[1].mxu0  ;;  %v572_v49 = vpop.f32.mrb[1].mxu1 }
  0xe9   : > { %v651_v50 = vadd.f32 %v492_v48, %v256_v42  ;;  %v667_v51 = vadd.f32 %v572_v49, %v272_v43  ;;  %v280_v42 = vld [vmem:[#allocation2 + $0xc0] sm:$0xff] }
  0xea   : > { %685 = vst.msk [vmem:[#allocation2 + $0x8] sm:$0xff] %vm223_vm0, %v652_v46  ;;  %701 = vst.msk [vmem:[#allocation2 + $0x88] sm:$0xff] %vm223_vm0, %v668_v47 }
  0xeb   : > { %684 = vst.msk [vmem:[#allocation2] sm:$0xff] %vm223_vm0, %v651_v50  ;;  %700 = vst.msk [vmem:[#allocation2 + $0x80] sm:$0xff] %vm223_vm0, %v667_v51  ;;  %v1003_v56 = vpop.f32.mrb[2].mxu0  ;;  %v1027_v57 = vpop.f32.mrb[2].mxu1  ;;  %v267_v51 = vld [vmem:[#allocation2 + $0x58] sm:$0xff] }
  0xec   : > { %v654_v58 = vadd.f32 %v1003_v56, %v259_v52  ;;  %v670_v59 = vadd.f32 %v1027_v57, %v275_v53  ;;  %v502_v60 = vpop.f32.mrb[3].mxu0  ;;  %v582_v61 = vpop.f32.mrb[3].mxu1  ;;  %v283_v52 = vld [vmem:[#allocation2 + $0xd8] sm:$0xff]  ;;  %v266_v57 = vld [vmem:[#allocation2 + $0x50] sm:$0xff] }
  0xed   : > { %v653_v62 = vadd.f32 %v502_v60, %v258_v54  ;;  %v669_v63 = vadd.f32 %v582_v61, %v274_v55 }
  0xee   : > { %687 = vst.msk [vmem:[#allocation2 + $0x18] sm:$0xff] %vm223_vm0, %v654_v58  ;;  %703 = vst.msk [vmem:[#allocation2 + $0x98] sm:$0xff] %vm223_vm0, %v670_v59 }
  0xef   : > { %686 = vst.msk [vmem:[#allocation2 + $0x10] sm:$0xff] %vm223_vm0, %v653_v62  ;;  %702 = vst.msk [vmem:[#allocation2 + $0x90] sm:$0xff] %vm223_vm0, %v669_v63  ;;  %v1006_v5 = vpop.f32.mrb[4].mxu0  ;;  %v1030_v6 = vpop.f32.mrb[4].mxu1  ;;  %v282_v62 = vld [vmem:[#allocation2 + $0xd0] sm:$0xff] }
  0xf0   : > { %v656_v7 = vadd.f32 %v1006_v5, %v261_v0  ;;  %v672_v8 = vadd.f32 %v1030_v6, %v277_v1  ;;  %v512_v9 = vpop.f32.mrb[5].mxu0  ;;  %v592_v10 = vpop.f32.mrb[5].mxu1 }
  0xf1   : > { %v720_v13 = vld [vmem:[#allocation2 + $0x8] sm:$0xff]  ;;  %v655_v15 = vadd.f32 %v512_v9, %v260_v2  ;;  %v671_v16 = vadd.f32 %v592_v10, %v276_v3 }
  0xf2   : > { %v736_v14 = vld [vmem:[#allocation2 + $0x88] sm:$0xff]  ;;  %v759_v18 = vadd.f32 %v1295_v4, %v720_v13  ;;  %v719_v20 = vld [vmem:[#allocation2] sm:$0xff]  ;;  %689 = vst.msk [vmem:[#allocation2 + $0x28] sm:$0xff] %vm223_vm0, %v656_v7  ;;  %705 = vst.msk [vmem:[#allocation2 + $0xa8] sm:$0xff] %vm223_vm0, %v672_v8 }
  0xf3   : > { %v775_v19 = vadd.f32 %v1295_v4, %v736_v14  ;;  %v735_v21 = vld [vmem:[#allocation2 + $0x80] sm:$0xff]  ;;  %v758_v23 = vadd.f32 %v1295_v4, %v719_v20  ;;  %688 = vst.msk [vmem:[#allocation2 + $0x20] sm:$0xff] %vm223_vm0, %v655_v15  ;;  %704 = vst.msk [vmem:[#allocation2 + $0xa0] sm:$0xff] %vm223_vm0, %v671_v16  ;;  %v1009_v25 = vpop.f32.mrb[6].mxu0  ;;  %v1033_v26 = vpop.f32.mrb[6].mxu1  ;;  %v269_v8 = vld [vmem:[#allocation2 + $0x68] sm:$0xff] }
  0xf4   : > { %v774_v24 = vadd.f32 %v1295_v4, %v735_v21  ;;  %791 = vst.msk [vmem:[%s1304_s9 + $0x8] sm:$0xff] %vm223_vm0, %v759_v18  ;;  %v658_v27 = vadd.f32 %v1009_v25, %v263_v11  ;;  %v674_v28 = vadd.f32 %v1033_v26, %v279_v12  ;;  %v522_v29 = vpop.f32.mrb[7].mxu0  ;;  %v602_v30 = vpop.f32.mrb[7].mxu1  ;;  %v285_v9 = vld [vmem:[#allocation2 + $0xe8] sm:$0xff]  ;;  %v268_v14 = vld [vmem:[#allocation2 + $0x60] sm:$0xff] }
  0xf5   : > { %807 = vst.msk [vmem:[%s1304_s9 + $0x88] sm:$0xff] %vm223_vm0, %v775_v19  ;;  %790 = vst.msk [vmem:[%s1304_s9] sm:$0xff] %vm223_vm0, %v758_v23  ;;  %v722_v33 = vld [vmem:[#allocation2 + $0x18] sm:$0xff]  ;;  %v657_v35 = vadd.f32 %v522_v29, %v262_v17  ;;  %v673_v36 = vadd.f32 %v602_v30, %v278_v22  ;;  %v284_v19 = vld [vmem:[#allocation2 + $0xe0] sm:$0xff] }
  0xf6   : > { %806 = vst.msk [vmem:[%s1304_s9 + $0x80] sm:$0xff] %vm223_vm0, %v774_v24  ;;  %v738_v34 = vld [vmem:[#allocation2 + $0x98] sm:$0xff]  ;;  %v761_v38 = vadd.f32 %v1295_v4, %v722_v33  ;;  %v721_v40 = vld [vmem:[#allocation2 + $0x10] sm:$0xff]  ;;  %691 = vst.msk [vmem:[#allocation2 + $0x38] sm:$0xff] %vm223_vm0, %v658_v27 }
  0xf7   : > { %v777_v39 = vadd.f32 %v1295_v4, %v738_v34  ;;  %v737_v41 = vld [vmem:[#allocation2 + $0x90] sm:$0xff]  ;;  %707 = vst.msk [vmem:[#allocation2 + $0xb8] sm:$0xff] %vm223_vm0, %v674_v28  ;;  %v760_v43 = vadd.f32 %v1295_v4, %v721_v40  ;;  %690 = vst.msk [vmem:[#allocation2 + $0x30] sm:$0xff] %vm223_vm0, %v657_v35  ;;  %v1012_v45 = vpop.f32.mrb[8].mxu0  ;;  %v1036_v46 = vpop.f32.mrb[8].mxu1  ;;  %v271_v28 = vld [vmem:[#allocation2 + $0x78] sm:$0xff] }
  0xf8   : > { %v776_v44 = vadd.f32 %v1295_v4, %v737_v41  ;;  %706 = vst.msk [vmem:[#allocation2 + $0xb0] sm:$0xff] %vm223_vm0, %v673_v36  ;;  %793 = vst.msk [vmem:[%s1304_s9 + $0x18] sm:$0xff] %vm223_vm0, %v761_v38  ;;  %v660_v47 = vadd.f32 %v1012_v45, %v265_v31  ;;  %v676_v48 = vadd.f32 %v1036_v46, %v281_v32  ;;  %v532_v49 = vpop.f32.mrb[9].mxu0  ;;  %v612_v50 = vpop.f32.mrb[9].mxu1  ;;  %v287_v29 = vld [vmem:[#allocation2 + $0xf8] sm:$0xff]  ;;  %v270_v34 = vld [vmem:[#allocation2 + $0x70] sm:$0xff] }
  0xf9   : > { %809 = vst.msk [vmem:[%s1304_s9 + $0x98] sm:$0xff] %vm223_vm0, %v777_v39  ;;  %792 = vst.msk [vmem:[%s1304_s9 + $0x10] sm:$0xff] %vm223_vm0, %v760_v43  ;;  %v724_v53 = vld [vmem:[#allocation2 + $0x28] sm:$0xff]  ;;  %v659_v55 = vadd.f32 %v532_v49, %v264_v37  ;;  %v675_v56 = vadd.f32 %v612_v50, %v280_v42  ;;  %v286_v39 = vld [vmem:[#allocation2 + $0xf0] sm:$0xff] }
  0xfa   : > { %808 = vst.msk [vmem:[%s1304_s9 + $0x90] sm:$0xff] %vm223_vm0, %v776_v44  ;;  %v740_v54 = vld [vmem:[#allocation2 + $0xa8] sm:$0xff]  ;;  %v763_v58 = vadd.f32 %v1295_v4, %v724_v53  ;;  %v723_v60 = vld [vmem:[#allocation2 + $0x20] sm:$0xff]  ;;  %693 = vst.msk [vmem:[#allocation2 + $0x48] sm:$0xff] %vm223_vm0, %v660_v47 }
  0xfb   : > { %v779_v59 = vadd.f32 %v1295_v4, %v740_v54  ;;  %v739_v61 = vld [vmem:[#allocation2 + $0xa0] sm:$0xff]  ;;  %709 = vst.msk [vmem:[#allocation2 + $0xc8] sm:$0xff] %vm223_vm0, %v676_v48  ;;  %v762_v63 = vadd.f32 %v1295_v4, %v723_v60  ;;  %692 = vst.msk [vmem:[#allocation2 + $0x40] sm:$0xff] %vm223_vm0, %v659_v55  ;;  %v1015_v1 = vpop.f32.mrb[10].mxu0  ;;  %v1039_v2 = vpop.f32.mrb[10].mxu1 }
  0xfc   : > { %v778_v0 = vadd.f32 %v1295_v4, %v739_v61  ;;  %708 = vst.msk [vmem:[#allocation2 + $0xc0] sm:$0xff] %vm223_vm0, %v675_v56  ;;  %795 = vst.msk [vmem:[%s1304_s9 + $0x28] sm:$0xff] %vm223_vm0, %v763_v58  ;;  %v662_v3 = vadd.f32 %v1015_v1, %v267_v51  ;;  %v678_v5 = vadd.f32 %v1039_v2, %v283_v52  ;;  %v542_v6 = vpop.f32.mrb[11].mxu0  ;;  %v622_v7 = vpop.f32.mrb[11].mxu1 }
  0xfd   : > { %811 = vst.msk [vmem:[%s1304_s9 + $0xa8] sm:$0xff] %vm223_vm0, %v779_v59  ;;  %794 = vst.msk [vmem:[%s1304_s9 + $0x20] sm:$0xff] %vm223_vm0, %v762_v63  ;;  %v726_v10 = vld [vmem:[#allocation2 + $0x38] sm:$0xff]  ;;  %v661_v12 = vadd.f32 %v542_v6, %v266_v57  ;;  %v677_v13 = vadd.f32 %v622_v7, %v282_v62 }
  0xfe   : > { %810 = vst.msk [vmem:[%s1304_s9 + $0xa0] sm:$0xff] %vm223_vm0, %v778_v0  ;;  %v742_v11 = vld [vmem:[#allocation2 + $0xb8] sm:$0xff]  ;;  %v765_v15 = vadd.f32 %v1295_v4, %v726_v10  ;;  %v725_v17 = vld [vmem:[#allocation2 + $0x30] sm:$0xff]  ;;  %695 = vst.msk [vmem:[#allocation2 + $0x58] sm:$0xff] %vm223_vm0, %v662_v3 }
  0xff   : > { %v781_v16 = vadd.f32 %v1295_v4, %v742_v11  ;;  %v741_v18 = vld [vmem:[#allocation2 + $0xb0] sm:$0xff]  ;;  %711 = vst.msk [vmem:[#allocation2 + $0xd8] sm:$0xff] %vm223_vm0, %v678_v5  ;;  %v764_v20 = vadd.f32 %v1295_v4, %v725_v17  ;;  %694 = vst.msk [vmem:[#allocation2 + $0x50] sm:$0xff] %vm223_vm0, %v661_v12  ;;  %v1018_v22 = vpop.f32.mrb[12].mxu0  ;;  %v1042_v23 = vpop.f32.mrb[12].mxu1 }
 0x100   : > { %v780_v21 = vadd.f32 %v1295_v4, %v741_v18  ;;  %710 = vst.msk [vmem:[#allocation2 + $0xd0] sm:$0xff] %vm223_vm0, %v677_v13  ;;  %797 = vst.msk [vmem:[%s1304_s9 + $0x38] sm:$0xff] %vm223_vm0, %v765_v15  ;;  %v664_v24 = vadd.f32 %v1018_v22, %v269_v8  ;;  %v680_v25 = vadd.f32 %v1042_v23, %v285_v9  ;;  %v552_v26 = vpop.f32.mrb[13].mxu0  ;;  %v632_v27 = vpop.f32.mrb[13].mxu1 }
 0x101   : > { %813 = vst.msk [vmem:[%s1304_s9 + $0xb8] sm:$0xff] %vm223_vm0, %v781_v16  ;;  %796 = vst.msk [vmem:[%s1304_s9 + $0x30] sm:$0xff] %vm223_vm0, %v764_v20  ;;  %v728_v30 = vld [vmem:[#allocation2 + $0x48] sm:$0xff]  ;;  %v663_v32 = vadd.f32 %v552_v26, %v268_v14  ;;  %v679_v33 = vadd.f32 %v632_v27, %v284_v19 }
 0x102   : > { %812 = vst.msk [vmem:[%s1304_s9 + $0xb0] sm:$0xff] %vm223_vm0, %v780_v21  ;;  %v744_v31 = vld [vmem:[#allocation2 + $0xc8] sm:$0xff]  ;;  %v767_v35 = vadd.f32 %v1295_v4, %v728_v30  ;;  %v727_v37 = vld [vmem:[#allocation2 + $0x40] sm:$0xff]  ;;  %697 = vst.msk [vmem:[#allocation2 + $0x68] sm:$0xff] %vm223_vm0, %v664_v24 }
 0x103   : > { %v783_v36 = vadd.f32 %v1295_v4, %v744_v31  ;;  %v743_v38 = vld [vmem:[#allocation2 + $0xc0] sm:$0xff]  ;;  %713 = vst.msk [vmem:[#allocation2 + $0xe8] sm:$0xff] %vm223_vm0, %v680_v25  ;;  %v766_v40 = vadd.f32 %v1295_v4, %v727_v37  ;;  %696 = vst.msk [vmem:[#allocation2 + $0x60] sm:$0xff] %vm223_vm0, %v663_v32  ;;  %v1021_v42 = vpop.f32.mrb[14].mxu0  ;;  %v1045_v43 = vpop.f32.mrb[14].mxu1 }
 0x104   : > { %v782_v41 = vadd.f32 %v1295_v4, %v743_v38  ;;  %712 = vst.msk [vmem:[#allocation2 + $0xe0] sm:$0xff] %vm223_vm0, %v679_v33  ;;  %799 = vst.msk [vmem:[%s1304_s9 + $0x48] sm:$0xff] %vm223_vm0, %v767_v35  ;;  %v666_v44 = vadd.f32 %v1021_v42, %v271_v28  ;;  %v682_v45 = vadd.f32 %v1045_v43, %v287_v29  ;;  %v562_v46 = vpop.f32.mrb[15].mxu0  ;;  %v642_v47 = vpop.f32.mrb[15].mxu1 }
 0x105   : > { %815 = vst.msk [vmem:[%s1304_s9 + $0xc8] sm:$0xff] %vm223_vm0, %v783_v36  ;;  %798 = vst.msk [vmem:[%s1304_s9 + $0x40] sm:$0xff] %vm223_vm0, %v766_v40  ;;  %v730_v48 = vld [vmem:[#allocation2 + $0x58] sm:$0xff]  ;;  %v665_v50 = vadd.f32 %v562_v46, %v270_v34  ;;  %v681_v51 = vadd.f32 %v642_v47, %v286_v39 }
 0x106   : > { %814 = vst.msk [vmem:[%s1304_s9 + $0xc0] sm:$0xff] %vm223_vm0, %v782_v41  ;;  %v746_v49 = vld [vmem:[#allocation2 + $0xd8] sm:$0xff]  ;;  %v769_v52 = vadd.f32 %v1295_v4, %v730_v48  ;;  %v729_v54 = vld [vmem:[#allocation2 + $0x50] sm:$0xff]  ;;  %699 = vst.msk [vmem:[#allocation2 + $0x78] sm:$0xff] %vm223_vm0, %v666_v44 }
 0x107   : > { %v785_v53 = vadd.f32 %v1295_v4, %v746_v49  ;;  %v745_v55 = vld [vmem:[#allocation2 + $0xd0] sm:$0xff]  ;;  %715 = vst.msk [vmem:[#allocation2 + $0xf8] sm:$0xff] %vm223_vm0, %v682_v45  ;;  %v768_v56 = vadd.f32 %v1295_v4, %v729_v54  ;;  %698 = vst.msk [vmem:[#allocation2 + $0x70] sm:$0xff] %vm223_vm0, %v665_v50 }
 0x108   : > { %v784_v57 = vadd.f32 %v1295_v4, %v745_v55  ;;  %714 = vst.msk [vmem:[#allocation2 + $0xf0] sm:$0xff] %vm223_vm0, %v681_v51  ;;  %801 = vst.msk [vmem:[%s1304_s9 + $0x58] sm:$0xff] %vm223_vm0, %v769_v52 }
 0x109   : > { %817 = vst.msk [vmem:[%s1304_s9 + $0xd8] sm:$0xff] %vm223_vm0, %v785_v53  ;;  %800 = vst.msk [vmem:[%s1304_s9 + $0x50] sm:$0xff] %vm223_vm0, %v768_v56  ;;  %v732_v58 = vld [vmem:[#allocation2 + $0x68] sm:$0xff] }
 0x10a   : > { %816 = vst.msk [vmem:[%s1304_s9 + $0xd0] sm:$0xff] %vm223_vm0, %v784_v57  ;;  %v748_v59 = vld [vmem:[#allocation2 + $0xe8] sm:$0xff]  ;;  %v771_v60 = vadd.f32 %v1295_v4, %v732_v58  ;;  %v731_v62 = vld [vmem:[#allocation2 + $0x60] sm:$0xff] }
 0x10b   : > { %v787_v61 = vadd.f32 %v1295_v4, %v748_v59  ;;  %v747_v63 = vld [vmem:[#allocation2 + $0xe0] sm:$0xff]  ;;  %v770_v0 = vadd.f32 %v1295_v4, %v731_v62 }
 0x10c   : > { %v786_v1 = vadd.f32 %v1295_v4, %v747_v63  ;;  %803 = vst.msk [vmem:[%s1304_s9 + $0x68] sm:$0xff] %vm223_vm0, %v771_v60 }
 0x10d   : > { %819 = vst.msk [vmem:[%s1304_s9 + $0xe8] sm:$0xff] %vm223_vm0, %v787_v61  ;;  %802 = vst.msk [vmem:[%s1304_s9 + $0x60] sm:$0xff] %vm223_vm0, %v770_v0  ;;  %v734_v2 = vld [vmem:[#allocation2 + $0x78] sm:$0xff] }
 0x10e   : > { %818 = vst.msk [vmem:[%s1304_s9 + $0xe0] sm:$0xff] %vm223_vm0, %v786_v1  ;;  %v750_v3 = vld [vmem:[#allocation2 + $0xf8] sm:$0xff]  ;;  %v773_v5 = vadd.f32 %v1295_v4, %v734_v2  ;;  %v733_v7 = vld [vmem:[#allocation2 + $0x70] sm:$0xff] }
 0x10f   : > { %v789_v6 = vadd.f32 %v1295_v4, %v750_v3  ;;  %v749_v8 = vld [vmem:[#allocation2 + $0xf0] sm:$0xff]  ;;  %v772_v9 = vadd.f32 %v1295_v4, %v733_v7 }
 0x110   : > { %v788_v10 = vadd.f32 %v1295_v4, %v749_v8  ;;  %805 = vst.msk [vmem:[%s1304_s9 + $0x78] sm:$0xff] %vm223_vm0, %v773_v5 }
 0x111   : > { %821 = vst.msk [vmem:[%s1304_s9 + $0xf8] sm:$0xff] %vm223_vm0, %v789_v6  ;;  %804 = vst.msk [vmem:[%s1304_s9 + $0x70] sm:$0xff] %vm223_vm0, %v772_v9 }
 0x112   : > { %820 = vst.msk [vmem:[%s1304_s9 + $0xf0] sm:$0xff] %vm223_vm0, %v788_v10 }
 0x113 PF: > { %s13_s14 = sadd.s32 1, %s1107_s14   ;;  %s1440_s12 = smov %s1103_s13 }
 0x114   : > { %p10_p5 = scmp.ge.s32.totalorder %s13_s14, 4   ;;  %s1441_s13 = smov %s1443_s15 }
 0x116   :  { %12 = sbr.rel (!%p10_p5) target bundleno = 2 (0x2), region = 73 }

</bundles_post_ra>
